<compile_context>
chip_gen: v7x
topology: tpu7x:2x2x1
jax: 0.10.0
libtpu: 0.0.40
codegen_flags: <defaults>
</compile_context>

<pallas_src>
import functools

import numpy as np
import jax
import jax.numpy as jnp
from jax import lax
from jax.experimental import pallas as pl
from jax.experimental.pallas import tpu as pltpu

_LANE = 128
_SUB = 8


def _round_up(x, m):
    return (x + m - 1) // m * m


def _vmem_limit_bytes():
    """Generation-aware scoped-VMEM limit (v7x has 64 MiB physical; v5e/v6e 128 MiB)."""
    try:
        kind = jax.devices()[0].device_kind.lower()
    except Exception:  # pragma: no cover - defensive
        kind = ""
    if "v5" in kind or "v6" in kind:
        return 64 << 20
    return 40 << 20  # conservative for v7x / unknown


def _fused_relu_conv_stats_kernel(x_ref, w_ref, mask_ref, y_ref, stats_ref,
                                  *, offsets, lseg, lout, inv_cnt):
    """Per image: in-VMEM im2col (lane rolls) + ReLU + conv matmul (bf16 MXU
    inputs, f32 accumulation) + per-image BN partials (mean, centered M2)."""
    cout_p = y_ref.shape[1]
    # ReLU once; keep f32 for the lane rolls (32-bit rotate is the safest path).
    x = jnp.maximum(x_ref[0].astype(jnp.float32), 0.0)          # (Cin_p, Lseg)

    acc = jnp.zeros((cout_p, lout), jnp.float32)
    for t, off in enumerate(offsets):                            # static kh*kw taps
        # s[:, q] = x[:, q + off]  (circular wrap only touches discarded lanes)
        s = x if off == 0 else pltpu.roll(x, lseg - off, 1)
        s = s[:, :lout].astype(jnp.bfloat16)                     # aligned slice
        acc = acc + jnp.dot(w_ref[t], s, preferred_element_type=jnp.float32)

    y_ref[0] = acc.astype(y_ref.dtype)                           # bf16 intermediate

    # BN partials from the f32 accumulator, masked to real output positions.
    m = mask_ref[...]                                            # (1, lout) {0,1}
    mu = jnp.sum(acc * m, axis=-1, keepdims=True) * inv_cnt      # (Cout_p, 1)
    d = (acc - mu) * m
    m2 = jnp.sum(d * d, axis=-1, keepdims=True)                  # (Cout_p, 1)
    lanes = lax.broadcasted_iota(jnp.int32, stats_ref.shape[1:], 1)
    # One full, lane-dense stats tile: lane 0 = mean, lane 1 = centered M2.
    stats_ref[0] = jnp.where(lanes == 0, mu, 0.0) + jnp.where(lanes == 1, m2, 0.0)


@functools.partial(jax.jit, static_argnames=("stride", "padding", "eps"))
def relu_conv_bn(x, w, gamma, beta, *, stride, padding, eps=1e-5):
    """x: (N, Cin, H, W) f32; w: (Cout, Cin, kh, kw) f32; gamma/beta: (Cout,)."""
    N, Cin, H, W = x.shape
    Cout, _, kh, kw = w.shape
    Hp, Wp = H + 2 * padding, W + 2 * padding
    Ho = (H + 2 * padding - kh) // stride + 1
    Wo = (W + 2 * padding - kw) // stride + 1
    Cin_p = _round_up(Cin, _SUB)
    Cout_p = _round_up(Cout, _SUB)         # Cout pads to 8 sublanes, not 128 lanes
    T = kh * kw

    # Flat per-image geometry: the kernel computes a stride-1 conv over whole
    # padded rows (width Wp), so every tap (i, j) is a single lane shift of
    # i*Wp + j on one flat strip.  Junk columns/rows are masked/sliced later.
    rows_needed = (Ho - 1) * stride + 1
    l_need = rows_needed * Wp
    LOUT = _round_up(l_need, _LANE)
    max_shift = (kh - 1) * Wp + (kw - 1)
    Lseg = _round_up(max(LOUT + max_shift, Hp * Wp), _LANE)

    # --- glue: pad + flatten the input once (kernel reads it once) -----------
    xp = jnp.pad(x, ((0, 0), (0, 0), (padding, padding), (padding, padding)))
    xflat = xp.reshape(N, Cin, Hp * Wp)
    xflat = jnp.pad(xflat, ((0, 0), (0, Cin_p - Cin), (0, Lseg - Hp * Wp)))
    xflat = xflat.astype(jnp.bfloat16)                           # (N, Cin_p, Lseg)

    # weights -> one (Cout_p, Cin_p) tap matrix per (i, j)
    wt = jnp.pad(w, ((0, Cout_p - Cout), (0, Cin_p - Cin), (0, 0), (0, 0)))
    wt = wt.transpose(2, 3, 0, 1).reshape(T, Cout_p, Cin_p).astype(jnp.bfloat16)

    # mask of flat positions that are real (strided) conv outputs
    q = np.arange(LOUT)
    hp, wp = q // Wp, q % Wp
    valid = ((q < l_need)
             & (hp % stride == 0) & (hp // stride < Ho)
             & (wp % stride == 0) & (wp // stride < Wo))
    mask = jnp.asarray(valid.astype(np.float32)).reshape(1, LOUT)

    offsets = tuple(i * Wp + j for i in range(kh) for j in range(kw))
    kernel = functools.partial(
        _fused_relu_conv_stats_kernel,
        offsets=offsets, lseg=Lseg, lout=LOUT, inv_cnt=1.0 / float(Ho * Wo))

    # TODO(synk): for large images / channel counts, tile each image over
    # output-row blocks (with a (kh-1)-row halo) and add a tap/Cin reduction
    # grid axis so the per-step VMEM working set stays bounded.
    y, stats = pl.pallas_call(
        kernel,
        out_shape=(jax.ShapeDtypeStruct((N, Cout_p, LOUT), jnp.bfloat16),
                   jax.ShapeDtypeStruct((N, Cout_p, _LANE), jnp.float32)),
        grid=(N,),
        in_specs=[pl.BlockSpec((1, Cin_p, Lseg), lambda n: (n, 0, 0)),
                  pl.BlockSpec((T, Cout_p, Cin_p), lambda n: (0, 0, 0)),
                  pl.BlockSpec((1, LOUT), lambda n: (0, 0))],
        out_specs=(pl.BlockSpec((1, Cout_p, LOUT), lambda n: (n, 0, 0)),
                   pl.BlockSpec((1, Cout_p, _LANE), lambda n: (n, 0, 0))),
        compiler_params=pltpu.CompilerParams(
            dimension_semantics=("parallel",),
            vmem_limit_bytes=_vmem_limit_bytes()),
    )(xflat, wt, mask)

    # --- glue: merge per-image BN partials (Chan) and fold into scale/shift ---
    mu_i = stats[:, :Cout, 0]                        # (N, Cout) per-image means
    m2_i = stats[:, :Cout, 1]                        # centered sum of squares
    cnt = float(Ho * Wo)                             # identical count per image
    mean = jnp.mean(mu_i, axis=0)
    m2 = jnp.sum(m2_i + cnt * (mu_i - mean[None, :]) ** 2, axis=0)
    var = jnp.maximum(m2 / (cnt * N), 0.0)           # biased (train-mode) variance
    inv_std = lax.rsqrt(var + eps)
    scale = gamma.astype(jnp.float32) * inv_std
    shift = beta.astype(jnp.float32) - mean * scale

    # --- fused XLA epilogue: de-pad, stride-subsample, scale/shift, NCHW ------
    # TODO(synk): compute only the strided output positions in-kernel instead of
    # dense stride-1 rows + subsampling here (wastes ~stride^2 work for stride>1).
    yv = y[:, :Cout, :l_need].astype(jnp.float32)
    yv = yv.reshape(N, Cout, rows_needed, Wp)[:, :, ::stride, ::stride]
    yv = yv[:, :, :Ho, :Wo]
    return yv * scale.reshape(1, Cout, 1, 1) + shift.reshape(1, Cout, 1, 1)


def reference(x, w, gamma, beta, *, stride, padding, eps=1e-5):
    """Pure-JAX f32 reference matching the PyTorch forward (train-mode BN)."""
    a = jnp.maximum(x, 0.0)
    y = lax.conv_general_dilated(
        a, w, window_strides=(stride, stride),
        padding=[(padding, padding), (padding, padding)],
        dimension_numbers=("NCHW", "OIHW", "NCHW"),
        precision=lax.Precision.HIGHEST)
    mean = y.mean(axis=(0, 2, 3), keepdims=True)
    var = ((y - mean) ** 2).mean(axis=(0, 2, 3), keepdims=True)
    return ((y - mean) / jnp.sqrt(var + eps)) * gamma.reshape(1, -1, 1, 1) \
        + beta.reshape(1, -1, 1, 1)


if __name__ == "__main__":
    # ReLUConvBN(C_in=4, C_out=8, kernel_size=3, stride=1, padding=1, affine=True)
    N, Cin, H, W = 2, 4, 16, 16
    Cout, ksz, stride, padding = 8, 3, 1, 1

    key = jax.random.PRNGKey(0)
    kx, kwt, kg, kb = jax.random.split(key, 4)
    x = jax.random.normal(kx, (N, Cin, H, W), dtype=jnp.float32)
    w = jax.random.normal(kwt, (Cout, Cin, ksz, ksz), dtype=jnp.float32) * 0.1
    gamma = 1.0 + 0.1 * jax.random.normal(kg, (Cout,), dtype=jnp.float32)
    beta = 0.1 * jax.random.normal(kb, (Cout,), dtype=jnp.float32)

    out = relu_conv_bn(x, w, gamma, beta, stride=stride, padding=padding)
    out = jax.block_until_ready(out)

    ref = reference(x, w, gamma, beta, stride=stride, padding=padding)
    # bf16 MXU inputs + bf16 intermediate (f32 accumulation) -> bf16-level tol.
    np.testing.assert_allclose(np.asarray(out), np.asarray(ref),
                               rtol=2e-2, atol=2e-2)
    print("KERNEL_OK")
</pallas_src>

<mosaic_0001>
module attributes {stable_mosaic.version = 11 : i64} {
  func.func @_fused_relu_conv_stats_kernel(%arg0: i32, %arg1: memref<1x8x512xbf16, #tpu.memory_space<vmem>>, %arg2: memref<9x8x8xbf16, #tpu.memory_space<vmem>>, %arg3: memref<1x384xf32, #tpu.memory_space<vmem>>, %arg4: memref<1x8x384xbf16, #tpu.memory_space<vmem>>, %arg5: memref<1x8x128xf32, #tpu.memory_space<vmem>>) attributes {dimension_semantics = [#tpu.dimension_semantics<parallel>], iteration_bounds = array<i64: 2>, scalar_prefetch = 0 : i64, scratch_operands = 0 : i64, tpu.core_type = #tpu.core_type<tc>, window_params = [{transform_indices = @transform_0, window_bounds = array<i64: 1, 8, 512>}, {pipeline_mode = #tpu.pipeline_mode<synchronous>, transform_indices = @transform_1, window_bounds = array<i64: 9, 8, 8>}, {pipeline_mode = #tpu.pipeline_mode<synchronous>, transform_indices = @transform_2, window_bounds = array<i64: 1, 384>}, {transform_indices = @transform_3, window_bounds = array<i64: 1, 8, 384>}, {transform_indices = @transform_4, window_bounds = array<i64: 1, 8, 128>}]} {
    %c0 = arith.constant 0 : index
    %c0_0 = arith.constant 0 : index
    %c0_1 = arith.constant 0 : index
    %0 = vector.load %arg1[%c0, %c0_0, %c0_1] : memref<1x8x512xbf16, #tpu.memory_space<vmem>>, vector<1x8x512xbf16>
    %1 = vector.shape_cast %0 : vector<1x8x512xbf16> to vector<8x512xbf16>
    %2 = arith.extf %1 : vector<8x512xbf16> to vector<8x512xf32>
    %cst = arith.constant 0.000000e+00 : f32
    %3 = vector.broadcast %cst : f32 to vector<8x512xf32>
    %4 = arith.maximumf %2, %3 : vector<8x512xf32>
    %cst_2 = arith.constant 0.000000e+00 : f32
    %5 = vector.broadcast %cst_2 : f32 to vector<8x384xf32>
    %6 = vector.extract_strided_slice %4 {offsets = [0, 0], sizes = [8, 384], strides = [1, 1]} : vector<8x512xf32> to vector<8x384xf32>
    %7 = arith.truncf %6 : vector<8x384xf32> to vector<8x384xbf16>
    %c0_3 = arith.constant 0 : index
    %c0_4 = arith.constant 0 : index
    %c0_5 = arith.constant 0 : index
    %8 = vector.load %arg2[%c0_3, %c0_4, %c0_5] : memref<9x8x8xbf16, #tpu.memory_space<vmem>>, vector<1x8x8xbf16>
    %9 = vector.shape_cast %8 : vector<1x8x8xbf16> to vector<8x8xbf16>
    %cst_6 = arith.constant dense<0.000000e+00> : vector<8x384xf32>
    %10 = tpu.matmul %9, %7, %cst_6 {dimension_numbers = #tpu.dot_dimension_numbers<[1], [0], [0], [1], [0, 0, 1, 1], [], []>} : vector<8x8xbf16>, vector<8x384xbf16>, vector<8x384xf32> -> vector<8x384xf32>
    %11 = arith.addf %5, %10 : vector<8x384xf32>
    %c511_i32 = arith.constant 511 : i32
    %12 = tpu.dynamic_rotate %4 by %c511_i32 dim 1 : vector<8x512xf32>, i32 -> vector<8x512xf32>
    %13 = vector.extract_strided_slice %12 {offsets = [0, 0], sizes = [8, 384], strides = [1, 1]} : vector<8x512xf32> to vector<8x384xf32>
    %14 = arith.truncf %13 : vector<8x384xf32> to vector<8x384xbf16>
    %c1 = arith.constant 1 : index
    %c0_7 = arith.constant 0 : index
    %c0_8 = arith.constant 0 : index
    %15 = vector.load %arg2[%c1, %c0_7, %c0_8] : memref<9x8x8xbf16, #tpu.memory_space<vmem>>, vector<1x8x8xbf16>
    %16 = vector.shape_cast %15 : vector<1x8x8xbf16> to vector<8x8xbf16>
    %cst_9 = arith.constant dense<0.000000e+00> : vector<8x384xf32>
    %17 = tpu.matmul %16, %14, %cst_9 {dimension_numbers = #tpu.dot_dimension_numbers<[1], [0], [0], [1], [0, 0, 1, 1], [], []>} : vector<8x8xbf16>, vector<8x384xbf16>, vector<8x384xf32> -> vector<8x384xf32>
    %18 = arith.addf %11, %17 : vector<8x384xf32>
    %c510_i32 = arith.constant 510 : i32
    %19 = tpu.dynamic_rotate %4 by %c510_i32 dim 1 : vector<8x512xf32>, i32 -> vector<8x512xf32>
    %20 = vector.extract_strided_slice %19 {offsets = [0, 0], sizes = [8, 384], strides = [1, 1]} : vector<8x512xf32> to vector<8x384xf32>
    %21 = arith.truncf %20 : vector<8x384xf32> to vector<8x384xbf16>
    %c2 = arith.constant 2 : index
    %c0_10 = arith.constant 0 : index
    %c0_11 = arith.constant 0 : index
    %22 = vector.load %arg2[%c2, %c0_10, %c0_11] : memref<9x8x8xbf16, #tpu.memory_space<vmem>>, vector<1x8x8xbf16>
    %23 = vector.shape_cast %22 : vector<1x8x8xbf16> to vector<8x8xbf16>
    %cst_12 = arith.constant dense<0.000000e+00> : vector<8x384xf32>
    %24 = tpu.matmul %23, %21, %cst_12 {dimension_numbers = #tpu.dot_dimension_numbers<[1], [0], [0], [1], [0, 0, 1, 1], [], []>} : vector<8x8xbf16>, vector<8x384xbf16>, vector<8x384xf32> -> vector<8x384xf32>
    %25 = arith.addf %18, %24 : vector<8x384xf32>
    %c494_i32 = arith.constant 494 : i32
    %26 = tpu.dynamic_rotate %4 by %c494_i32 dim 1 : vector<8x512xf32>, i32 -> vector<8x512xf32>
    %27 = vector.extract_strided_slice %26 {offsets = [0, 0], sizes = [8, 384], strides = [1, 1]} : vector<8x512xf32> to vector<8x384xf32>
    %28 = arith.truncf %27 : vector<8x384xf32> to vector<8x384xbf16>
    %c3 = arith.constant 3 : index
    %c0_13 = arith.constant 0 : index
    %c0_14 = arith.constant 0 : index
    %29 = vector.load %arg2[%c3, %c0_13, %c0_14] : memref<9x8x8xbf16, #tpu.memory_space<vmem>>, vector<1x8x8xbf16>
    %30 = vector.shape_cast %29 : vector<1x8x8xbf16> to vector<8x8xbf16>
    %cst_15 = arith.constant dense<0.000000e+00> : vector<8x384xf32>
    %31 = tpu.matmul %30, %28, %cst_15 {dimension_numbers = #tpu.dot_dimension_numbers<[1], [0], [0], [1], [0, 0, 1, 1], [], []>} : vector<8x8xbf16>, vector<8x384xbf16>, vector<8x384xf32> -> vector<8x384xf32>
    %32 = arith.addf %25, %31 : vector<8x384xf32>
    %c493_i32 = arith.constant 493 : i32
    %33 = tpu.dynamic_rotate %4 by %c493_i32 dim 1 : vector<8x512xf32>, i32 -> vector<8x512xf32>
    %34 = vector.extract_strided_slice %33 {offsets = [0, 0], sizes = [8, 384], strides = [1, 1]} : vector<8x512xf32> to vector<8x384xf32>
    %35 = arith.truncf %34 : vector<8x384xf32> to vector<8x384xbf16>
    %c4 = arith.constant 4 : index
    %c0_16 = arith.constant 0 : index
    %c0_17 = arith.constant 0 : index
    %36 = vector.load %arg2[%c4, %c0_16, %c0_17] : memref<9x8x8xbf16, #tpu.memory_space<vmem>>, vector<1x8x8xbf16>
    %37 = vector.shape_cast %36 : vector<1x8x8xbf16> to vector<8x8xbf16>
    %cst_18 = arith.constant dense<0.000000e+00> : vector<8x384xf32>
    %38 = tpu.matmul %37, %35, %cst_18 {dimension_numbers = #tpu.dot_dimension_numbers<[1], [0], [0], [1], [0, 0, 1, 1], [], []>} : vector<8x8xbf16>, vector<8x384xbf16>, vector<8x384xf32> -> vector<8x384xf32>
    %39 = arith.addf %32, %38 : vector<8x384xf32>
    %c492_i32 = arith.constant 492 : i32
    %40 = tpu.dynamic_rotate %4 by %c492_i32 dim 1 : vector<8x512xf32>, i32 -> vector<8x512xf32>
    %41 = vector.extract_strided_slice %40 {offsets = [0, 0], sizes = [8, 384], strides = [1, 1]} : vector<8x512xf32> to vector<8x384xf32>
    %42 = arith.truncf %41 : vector<8x384xf32> to vector<8x384xbf16>
    %c5 = arith.constant 5 : index
    %c0_19 = arith.constant 0 : index
    %c0_20 = arith.constant 0 : index
    %43 = vector.load %arg2[%c5, %c0_19, %c0_20] : memref<9x8x8xbf16, #tpu.memory_space<vmem>>, vector<1x8x8xbf16>
    %44 = vector.shape_cast %43 : vector<1x8x8xbf16> to vector<8x8xbf16>
    %cst_21 = arith.constant dense<0.000000e+00> : vector<8x384xf32>
    %45 = tpu.matmul %44, %42, %cst_21 {dimension_numbers = #tpu.dot_dimension_numbers<[1], [0], [0], [1], [0, 0, 1, 1], [], []>} : vector<8x8xbf16>, vector<8x384xbf16>, vector<8x384xf32> -> vector<8x384xf32>
    %46 = arith.addf %39, %45 : vector<8x384xf32>
    %c476_i32 = arith.constant 476 : i32
    %47 = tpu.dynamic_rotate %4 by %c476_i32 dim 1 : vector<8x512xf32>, i32 -> vector<8x512xf32>
    %48 = vector.extract_strided_slice %47 {offsets = [0, 0], sizes = [8, 384], strides = [1, 1]} : vector<8x512xf32> to vector<8x384xf32>
    %49 = arith.truncf %48 : vector<8x384xf32> to vector<8x384xbf16>
    %c6 = arith.constant 6 : index
    %c0_22 = arith.constant 0 : index
    %c0_23 = arith.constant 0 : index
    %50 = vector.load %arg2[%c6, %c0_22, %c0_23] : memref<9x8x8xbf16, #tpu.memory_space<vmem>>, vector<1x8x8xbf16>
    %51 = vector.shape_cast %50 : vector<1x8x8xbf16> to vector<8x8xbf16>
    %cst_24 = arith.constant dense<0.000000e+00> : vector<8x384xf32>
    %52 = tpu.matmul %51, %49, %cst_24 {dimension_numbers = #tpu.dot_dimension_numbers<[1], [0], [0], [1], [0, 0, 1, 1], [], []>} : vector<8x8xbf16>, vector<8x384xbf16>, vector<8x384xf32> -> vector<8x384xf32>
    %53 = arith.addf %46, %52 : vector<8x384xf32>
    %c475_i32 = arith.constant 475 : i32
    %54 = tpu.dynamic_rotate %4 by %c475_i32 dim 1 : vector<8x512xf32>, i32 -> vector<8x512xf32>
    %55 = vector.extract_strided_slice %54 {offsets = [0, 0], sizes = [8, 384], strides = [1, 1]} : vector<8x512xf32> to vector<8x384xf32>
    %56 = arith.truncf %55 : vector<8x384xf32> to vector<8x384xbf16>
    %c7 = arith.constant 7 : index
    %c0_25 = arith.constant 0 : index
    %c0_26 = arith.constant 0 : index
    %57 = vector.load %arg2[%c7, %c0_25, %c0_26] : memref<9x8x8xbf16, #tpu.memory_space<vmem>>, vector<1x8x8xbf16>
    %58 = vector.shape_cast %57 : vector<1x8x8xbf16> to vector<8x8xbf16>
    %cst_27 = arith.constant dense<0.000000e+00> : vector<8x384xf32>
    %59 = tpu.matmul %58, %56, %cst_27 {dimension_numbers = #tpu.dot_dimension_numbers<[1], [0], [0], [1], [0, 0, 1, 1], [], []>} : vector<8x8xbf16>, vector<8x384xbf16>, vector<8x384xf32> -> vector<8x384xf32>
    %60 = arith.addf %53, %59 : vector<8x384xf32>
    %c474_i32 = arith.constant 474 : i32
    %61 = tpu.dynamic_rotate %4 by %c474_i32 dim 1 : vector<8x512xf32>, i32 -> vector<8x512xf32>
    %62 = vector.extract_strided_slice %61 {offsets = [0, 0], sizes = [8, 384], strides = [1, 1]} : vector<8x512xf32> to vector<8x384xf32>
    %63 = arith.truncf %62 : vector<8x384xf32> to vector<8x384xbf16>
    %c8 = arith.constant 8 : index
    %c0_28 = arith.constant 0 : index
    %c0_29 = arith.constant 0 : index
    %64 = vector.load %arg2[%c8, %c0_28, %c0_29] : memref<9x8x8xbf16, #tpu.memory_space<vmem>>, vector<1x8x8xbf16>
    %65 = vector.shape_cast %64 : vector<1x8x8xbf16> to vector<8x8xbf16>
    %cst_30 = arith.constant dense<0.000000e+00> : vector<8x384xf32>
    %66 = tpu.matmul %65, %63, %cst_30 {dimension_numbers = #tpu.dot_dimension_numbers<[1], [0], [0], [1], [0, 0, 1, 1], [], []>} : vector<8x8xbf16>, vector<8x384xbf16>, vector<8x384xf32> -> vector<8x384xf32>
    %67 = arith.addf %60, %66 : vector<8x384xf32>
    %68 = arith.truncf %67 : vector<8x384xf32> to vector<8x384xbf16>
    %c0_31 = arith.constant 0 : index
    %c0_32 = arith.constant 0 : index
    %c0_33 = arith.constant 0 : index
    %69 = vector.load %arg4[%c0_31, %c0_32, %c0_33] : memref<1x8x384xbf16, #tpu.memory_space<vmem>>, vector<1x8x384xbf16>
    %70 = vector.shape_cast %69 : vector<1x8x384xbf16> to vector<8x384xbf16>
    %71 = vector.shape_cast %68 : vector<8x384xbf16> to vector<1x8x384xbf16>
    tpu.vector_store %arg4[%c0_31, %c0_32, %c0_33], %71 {strides = array<i32>} : memref<1x8x384xbf16, #tpu.memory_space<vmem>>, vector<1x8x384xbf16>,
    %c0_34 = arith.constant 0 : index
    %c0_35 = arith.constant 0 : index
    %72 = vector.load %arg3[%c0_34, %c0_35] : memref<1x384xf32, #tpu.memory_space<vmem>>, vector<1x384xf32>
    %73 = vector.broadcast %72 : vector<1x384xf32> to vector<8x384xf32>
    %74 = arith.mulf %67, %73 : vector<8x384xf32>
    %cst_36 = arith.constant dense<0.000000e+00> : vector<8xf32>
    %75 = vector.multi_reduction <add>, %74, %cst_36 [1] : vector<8x384xf32> to vector<8xf32>
    %76 = vector.shape_cast %75 : vector<8xf32> to vector<8x1xf32>
    %cst_37 = arith.constant 3.906250e-03 : f32
    %77 = vector.broadcast %cst_37 : f32 to vector<8x1xf32>
    %78 = arith.mulf %76, %77 : vector<8x1xf32>
    %79 = vector.broadcast %78 : vector<8x1xf32> to vector<8x384xf32>
    %80 = arith.subf %67, %79 : vector<8x384xf32>
    %81 = vector.broadcast %72 : vector<1x384xf32> to vector<8x384xf32>
    %82 = arith.mulf %80, %81 : vector<8x384xf32>
    %83 = arith.mulf %82, %82 : vector<8x384xf32>
    %cst_38 = arith.constant dense<0.000000e+00> : vector<8xf32>
    %84 = vector.multi_reduction <add>, %83, %cst_38 [1] : vector<8x384xf32> to vector<8xf32>
    %85 = vector.shape_cast %84 : vector<8xf32> to vector<8x1xf32>
    %86 = tpu.iota {dimensions = array<i32: 1>} : vector<8x128xi32>
    %c0_i32 = arith.constant 0 : i32
    %87 = vector.broadcast %c0_i32 : i32 to vector<8x128xi32>
    %88 = arith.cmpi eq, %86, %87 : vector<8x128xi32>
    %cst_39 = arith.constant 0.000000e+00 : f32
    %89 = vector.shape_cast %78 : vector<8x1xf32> to vector<8x1xf32>
    %90 = vector.broadcast %89 : vector<8x1xf32> to vector<8x128xf32>
    %91 = vector.broadcast %cst_39 : f32 to vector<8x128xf32>
    %92 = arith.select %88, %90, %91 : vector<8x128xi1>, vector<8x128xf32>
    %c1_i32 = arith.constant 1 : i32
    %93 = vector.broadcast %c1_i32 : i32 to vector<8x128xi32>
    %94 = arith.cmpi eq, %86, %93 : vector<8x128xi32>
    %cst_40 = arith.constant 0.000000e+00 : f32
    %95 = vector.shape_cast %85 : vector<8x1xf32> to vector<8x1xf32>
    %96 = vector.broadcast %95 : vector<8x1xf32> to vector<8x128xf32>
    %97 = vector.broadcast %cst_40 : f32 to vector<8x128xf32>
    %98 = arith.select %94, %96, %97 : vector<8x128xi1>, vector<8x128xf32>
    %99 = arith.addf %92, %98 : vector<8x128xf32>
    %c0_41 = arith.constant 0 : index
    %c0_42 = arith.constant 0 : index
    %c0_43 = arith.constant 0 : index
    %100 = vector.load %arg5[%c0_41, %c0_42, %c0_43] : memref<1x8x128xf32, #tpu.memory_space<vmem>>, vector<1x8x128xf32>
    %101 = vector.shape_cast %100 : vector<1x8x128xf32> to vector<8x128xf32>
    %102 = vector.shape_cast %99 : vector<8x128xf32> to vector<1x8x128xf32>
    tpu.vector_store %arg5[%c0_41, %c0_42, %c0_43], %102 {strides = array<i32>} : memref<1x8x128xf32, #tpu.memory_space<vmem>>, vector<1x8x128xf32>,
    return
  }
  func.func @transform_0(%arg0: i32) -> (i32, i32, i32) {
    %c0_i32 = arith.constant 0 : i32
    %c0_i32_0 = arith.constant 0 : i32
    %c0_i32_1 = arith.constant 0 : i32
    return %arg0, %c0_i32, %c0_i32_0 : i32, i32, i32
  }
  func.func @transform_1(%arg0: i32) -> (i32, i32, i32) {
    %c0_i32 = arith.constant 0 : i32
    %c0_i32_0 = arith.constant 0 : i32
    %c0_i32_1 = arith.constant 0 : i32
    %c0_i32_2 = arith.constant 0 : i32
    return %c0_i32, %c0_i32_0, %c0_i32_1 : i32, i32, i32
  }
  func.func @transform_2(%arg0: i32) -> (i32, i32) {
    %c0_i32 = arith.constant 0 : i32
    %c0_i32_0 = arith.constant 0 : i32
    %c0_i32_1 = arith.constant 0 : i32
    return %c0_i32, %c0_i32_0 : i32, i32
  }
  func.func @transform_3(%arg0: i32) -> (i32, i32, i32) {
    %c0_i32 = arith.constant 0 : i32
    %c0_i32_0 = arith.constant 0 : i32
    %c0_i32_1 = arith.constant 0 : i32
    return %arg0, %c0_i32, %c0_i32_0 : i32, i32, i32
  }
  func.func @transform_4(%arg0: i32) -> (i32, i32, i32) {
    %c0_i32 = arith.constant 0 : i32
    %c0_i32_0 = arith.constant 0 : i32
    %c0_i32_1 = arith.constant 0 : i32
    return %arg0, %c0_i32, %c0_i32_0 : i32, i32, i32
  }
}

</mosaic_0001>

<bundles_post_ra>
// kernel: relu_conv_bn.1
= control target key start
LH: loop header
LB: loop body
LE: loop exit
PB: predicated region body
PF: predicated region fallthrough
CT: control target
= control target key end

     0   :  { %s1658_s15 = smov 0   ;;  %s1872_s0 = inlined_call_operand.vmem [shape: bf16[2,8,512], index: 0, kind: input, shape index: {}]   ;;  %s1873_s1 = inlined_call_operand.vmem [shape: bf16[9,8,8], index: 1, kind: input, shape index: {}]   ;;  %s1874_s2 = inlined_call_operand.vmem [shape: f32[1,384], index: 2, kind: input, shape index: {}]   ;;  %s1875_s3 = inlined_call_operand.vmem [shape: bf16[2,8,384], index: 3, kind: output, shape index: {0}]   ;;  %s1876_s4 = inlined_call_operand.vmem [shape: f32[2,8,128], index: 4, kind: output, shape index: {1}]  }
   0x1 LB: > { %s1367_s16 = sadd.s32 4294967295, %s1620_s15   ;;  %p1371_p0 = scmp.ge.s32.totalorder %s1620_s15, 1  ;;  %s1620_s15 = sphi %s1658_s15, %s15_s15  }
   0x2   : > { %p165_p1 = scmp.lt.s32.totalorder %s1620_s15, 3 }
   0x4   : > { %p166_p2 = pnand %p1371_p0, %p165_p1 }
   0x5   : > { %p195_p3 = scmp.lt.s32.totalorder (!%p166_p2), %s1367_s16, 1  ;;  %v1622_v5 = vmov (!%p166_p2), 0.0   ;;  %v1623_v10 = vmov (!%p166_p2), 0   ;;  %vm1624_vm0 = vmmov (!%p166_p2), 0   ;;  %s1625_s21 = smov (!%p166_p2), 127   ;;  %v232_v13 = vlaneseq (!%p166_p2) }
   0x6   : > { %169 = sbr.rel (%p166_p2) target bundleno = 764 (0x2fc), region = 32  ;;  %1436 = vmatprep.subr.bf16.mxu1 (!%p166_p2), %v1622_v5  ;;  %289 = vmatprep.mubr.bf16.mxu0 (!%p166_p2), %v1623_v10  ;;  %s1626_s22 = smov (!%p166_p2), 126   ;;  %vm247_vm2 = vcmask (!%p166_p2), 1043456   ;;  %v1376_v34 = vld [vmem:[%s1873_s1 + $0x4] sm:$0xf] (!%p166_p2)  ;;  %vm243_vm4 = vcmask (!%p166_p2), 64512  }
   0x7   : > { %1438 = vmatprep.mubr.msk.bf16.mxu1 (!%p166_p2), %vm1624_vm0, %v1622_v5  ;;  %s1627_s23 = smov (!%p166_p2), 110   ;;  %s1628_s24 = smov (!%p166_p2), 109   ;;  %v1693_v14 = vand.u32 (!%p166_p2), 127, %v232_v13  ;;  %v223_v49 = vld [vmem:[%s1873_s1] sm:$0xf] (!%p166_p2) }
   0x8   : > { %s1629_s25 = smov (!%p166_p2), 108   ;;  %s1630_s26 = smov (!%p166_p2), 92   ;;  %v1383_v63 = vld [vmem:[%s1873_s1 + $0x8] sm:$0xf] (!%p166_p2) }
   0x9   : > { %s1631_s27 = smov (!%p166_p2), 91   ;;  %s1632_s28 = smov (!%p166_p2), 90   ;;  %vm234_vm1 = vcmp.lt.s32.totalorder (!%p166_p2), %v1693_v14, 127  ;;  %vm439_vm3 = vcmp.lt.s32.totalorder (!%p166_p2), %v1693_v14, 126  ;;  %vm552_vm5 = vcmp.lt.s32.totalorder (!%p166_p2), %v1693_v14, 110  ;;  %vm665_vm6 = vcmp.lt.s32.totalorder (!%p166_p2), %v1693_v14, 109 }
   0xa   : > { %vm778_vm7 = vcmp.lt.s32.totalorder (!%p166_p2), %v1693_v14, 108  ;;  %vm891_vm8 = vcmp.lt.s32.totalorder (!%p166_p2), %v1693_v14, 92  ;;  %vm1004_vm9 = vcmp.lt.s32.totalorder (!%p166_p2), %v1693_v14, 91  ;;  %vm1117_vm10 = vcmp.lt.s32.totalorder (!%p166_p2), %v1693_v14, 90 }
   0xb   : > { %vm1275_vm11 = vcmp.eq.s32.totalorder (!%p166_p2), %v1693_v14, 0  ;;  %vm1277_vm12 = vcmp.eq.s32.totalorder (!%p166_p2), %v1693_v14, 1 }
   0xd   : > { %s1878_s16 = smov (!%p195_p3, %s1367_s16), 1 }
   0xe   : > { %s1415_s17 = sshll.u32 %s1878_s16, 4  ;;  %s1375_s29 = sshll.u32 %s1878_s16, 3 }
   0xf   : > { %s199_s20 = scalar_lea.vmem %s1872_s0, %s1415_s17  ;;  %s208_s6 = scalar_lea.vmem %s1876_s4, %s1375_s29 }
  0x10   : > { %v210_v0 = vld [vmem:[%s199_s20] sm:$0xff]  ;;  %v211_v1 = vld [vmem:[%s199_s20 + $0x8] sm:$0xff] }
  0x11   : > { %v212_v2 = vunpack.c.l.bf16 %v210_v0  ;;  %v213_v3 = vunpack.c.h.bf16 %v210_v0  ;;  %v215_v4 = vunpack.c.h.bf16 %v211_v1  ;;  %v214_v9 = vunpack.c.l.bf16 %v211_v1 }
  0x13   : > { %v1673_v6 = vmax.f32 %v212_v2, 0.0  ;;  %v1675_v7 = vmax.f32 %v213_v3, 0.0  ;;  %v219_v8 = vmax.f32 %v215_v4, 0.0  ;;  %v1682_v12 = vmax.f32 %v214_v9, 0.0 }
  0x15   : > { %v1574_v11 = vpack.i.bf16 %v1675_v7, %v1673_v6  ;;  %230 = vrot.lane.b32.xlu1 %v219_v8, %s1625_s21  ;;  %v221_v22 = vpack.c.bf16 %v1675_v7, %v1675_v7  ;;  %v220_v26 = vpack.c.bf16 %v1673_v6, %v1673_v6  ;;  %v222_v30 = vpack.c.bf16 %v1682_v12, %v1682_v12 }
  0x17   : > { %1575 = vrot.lane.b32.xlu0 %v1574_v11, %s1625_s21  ;;  %v342_v36 = vsel %vm247_vm2, %v220_v26, 0  ;;  %v348_v37 = vsel %vm247_vm2, %v222_v30, 0 }
  0x19   : > { %1580 = vrot.lane.b32.xlu1 %v1574_v11, %s1626_s22 }
  0x1b   : > { %228 = vrot.lane.b32.xlu0 %v1682_v12, %s1625_s21 }
  0x1d   : > { %437 = vrot.lane.b32.xlu1 %v219_v8, %s1626_s22 }
  0x1f   : > { %435 = vrot.lane.b32.xlu0 %v1682_v12, %s1626_s22 }
  0x21   : > { %548 = vrot.lane.b32.xlu1 %v1682_v12, %s1627_s23 }
  0x23   : > { %1585 = vrot.lane.b32.xlu0 %v1574_v11, %s1627_s23 }
  0x25   : > { %1590 = vrot.lane.b32.xlu1 %v1574_v11, %s1628_s24 }
  0x27   : > { %550 = vrot.lane.b32.xlu0 %v219_v8, %s1627_s23 }
  0x29   : > { %663 = vrot.lane.b32.xlu1 %v219_v8, %s1628_s24 }
  0x2b   : > { %661 = vrot.lane.b32.xlu0 %v1682_v12, %s1628_s24 }
  0x2d   : > { %774 = vrot.lane.b32.xlu1 %v1682_v12, %s1629_s25 }
  0x2f   : > { %1595 = vrot.lane.b32.xlu0 %v1574_v11, %s1629_s25 }
  0x31   : > { %1600 = vrot.lane.b32.xlu1 %v1574_v11, %s1630_s26 }
  0x33   : > { %776 = vrot.lane.b32.xlu0 %v219_v8, %s1629_s25  ;;  %s1554_s25 = smul.u32 12, %s1878_s16 }
  0x35   : > { %889 = vrot.lane.b32.xlu1 %v219_v8, %s1630_s26 }
  0x37   : > { %887 = vrot.lane.b32.xlu0 %v1682_v12, %s1630_s26 }
  0x39   : > { %1000 = vrot.lane.b32.xlu1 %v1682_v12, %s1631_s27 }
  0x3b   : > { %1605 = vrot.lane.b32.xlu0 %v1574_v11, %s1631_s27 }
  0x3d   : > { %1610 = vrot.lane.b32.xlu1 %v1574_v11, %s1632_s28 }
  0x3f   : > { %1002 = vrot.lane.b32.xlu0 %v219_v8, %s1631_s27 }
  0x41   : > { %1115 = vrot.lane.b32.xlu1 %v219_v8, %s1632_s28 }
  0x43   : > { %1113 = vrot.lane.b32.xlu0 %v1682_v12, %s1632_s28  ;;  %s204_s28 = scalar_lea.vmem %s1875_s3, %s1554_s25 }
  0x87   : > { %v231_v16 = vpop.permute.xlu1 %230 }
  0x89   : > { %v1576_v15 = vpop.permute.xlu0 %1575 }
  0x8a   : > { %v1578_v17 = vunpack.i.h.bf16 %v1576_v15  ;;  %v1577_v18 = vunpack.i.l.bf16 %v1576_v15 }
  0x8b   : > { %v1581_v23 = vpop.permute.xlu1 %1580 }
  0x8c   : > { %v237_v19 = vsel %vm234_vm1, %v1577_v18, %v1578_v17  ;;  %v1583_v27 = vunpack.i.h.bf16 %v1581_v23  ;;  %v1582_v38 = vunpack.i.l.bf16 %v1581_v23 }
  0x8d   : > { %v229_v20 = vpop.permute.xlu0 %228  ;;  %v238_v21 = vpack.c.bf16 %v237_v19, %v237_v19 }
  0x8e   : > { %v235_v24 = vsel %vm234_vm1, %v229_v20, %v231_v16  ;;  %v236_v25 = vsel %vm234_vm1, %v1578_v17, %v229_v20  ;;  %v442_v42 = vsel %vm439_vm3, %v1582_v38, %v1583_v27  ;;  %v1387_v17 = vld [vmem:[%s1873_s1 + $0xc] sm:$0xf] }
  0x8f   : > { %v240_v28 = vpack.c.bf16 %v235_v24, %v235_v24  ;;  %v239_v29 = vpack.c.bf16 %v236_v25, %v236_v25  ;;  %v249_v31 = vsel %vm247_vm2, %v238_v21, 0  ;;  %v438_v40 = vpop.permute.xlu1 %437  ;;  %v443_v47 = vpack.c.bf16 %v442_v42, %v442_v42 }
  0x91   : > { %1377 = vmatprep.subr.msk.bf16.mxu0 %vm247_vm2, %v239_v29  ;;  %v255_v32 = vsel %vm247_vm2, %v240_v28, 0  ;;  %v436_v33 = vpop.permute.xlu0 %435  ;;  %v452_v50 = vsel %vm247_vm2, %v443_v47, 0 }
  0x92   : > { %258 = vmatpush1.bf16.msra.mxu0 %v249_v31  ;;  %1437 = vmatpush3.bf16.msra.mxu1 %v255_v32  ;;  %v441_v35 = vsel %vm439_vm3, %v1583_v27, %v436_v33  ;;  %v440_v41 = vsel %vm439_vm3, %v436_v33, %v438_v40  ;;  %v1391_v31 = vld [vmem:[%s1873_s1 + $0x10] sm:$0xf] }
  0x93   : > { %1380 = vmatprep.subr.msk.bf16.mxu0 %vm247_vm2, %v221_v22  ;;  %1442 = vmatprep.subr.bf16.mxu1 %v1622_v5  ;;  %v444_v39 = vpack.c.bf16 %v441_v35, %v441_v35  ;;  %v549_v45 = vpop.permute.xlu1 %548  ;;  %v445_v46 = vpack.c.bf16 %v440_v41, %v440_v41 }
  0x95   : > { %1378 = vmatmul.mubr.msk.bf16.vlgmr.msra.gmra.mrb[0].mxu0 %vm243_vm4, %v1376_v34  ;;  %1439 = vmatmul.mubr.msk.bf16.vlgmr.msra.gmra.mrb[0].mxu1 %vm243_vm4, %v1376_v34  ;;  %v1586_v43 = vpop.permute.xlu0 %1585  ;;  %v458_v51 = vsel %vm247_vm2, %v445_v46, 0 }
  0x96   : > { %351 = vmatpush1.bf16.msra.mxu0 %v342_v36  ;;  %1443 = vmatpush3.bf16.msra.mxu1 %v348_v37  ;;  %v1588_v44 = vunpack.i.h.bf16 %v1586_v43  ;;  %v1587_v52 = vunpack.i.l.bf16 %v1586_v43 }
  0x97   : > { %382 = vmatprep.mubr.bf16.mxu0 %v1623_v10  ;;  %1444 = vmatprep.mubr.msk.bf16.mxu1 %vm1624_vm0, %v1622_v5  ;;  %v1591_v57 = vpop.permute.xlu1 %1590 }
  0x98   : > { %1384 = vmatprep.subr.msk.bf16.mxu0 %vm247_vm2, %v444_v39  ;;  %1448 = vmatprep.subr.bf16.mxu1 %v1622_v5  ;;  %v554_v48 = vsel %vm552_vm5, %v1588_v44, %v549_v45  ;;  %v555_v56 = vsel %vm552_vm5, %v1587_v52, %v1588_v44  ;;  %v1593_v58 = vunpack.i.h.bf16 %v1591_v57  ;;  %v1592_v2 = vunpack.i.l.bf16 %v1591_v57 }
  0x99   : > { %v557_v53 = vpack.c.bf16 %v554_v48, %v554_v48  ;;  %v551_v54 = vpop.permute.xlu0 %550  ;;  %v556_v61 = vpack.c.bf16 %v555_v56, %v555_v56 }
  0x9a   : > { %v553_v55 = vsel %vm552_vm5, %v549_v45, %v551_v54  ;;  %v668_v7 = vsel %vm665_vm6, %v1592_v2, %v1593_v58  ;;  %v1395_v45 = vld [vmem:[%s1873_s1 + $0x14] sm:$0xf] }
  0x9b   : > { %v558_v60 = vpack.c.bf16 %v553_v55, %v553_v55  ;;  %v565_v0 = vsel %vm247_vm2, %v556_v61, 0  ;;  %v664_v4 = vpop.permute.xlu1 %663  ;;  %v669_v15 = vpack.c.bf16 %v668_v7, %v668_v7 }
  0x9d   : > { %v662_v59 = vpop.permute.xlu0 %661  ;;  %v571_v1 = vsel %vm247_vm2, %v558_v60, 0  ;;  %v678_v18 = vsel %vm247_vm2, %v669_v15, 0  ;;  %v1237_v15 = vld [vmem:[%s1874_s2] sm:$0x7] }
  0x9e   : > { %v667_v62 = vsel %vm665_vm6, %v1593_v58, %v662_v59  ;;  %v666_v6 = vsel %vm665_vm6, %v662_v59, %v664_v4  ;;  %v1399_v59 = vld [vmem:[%s1873_s1 + $0x18] sm:$0xf] }
  0x9f   : > { %v670_v3 = vpack.c.bf16 %v667_v62, %v667_v62  ;;  %v775_v11 = vpop.permute.xlu1 %774  ;;  %v671_v12 = vpack.c.bf16 %v666_v6, %v666_v6  ;;  %v1403_v6 = vld [vmem:[%s1873_s1 + $0x1c] sm:$0xf] }
  0xa1   : > { %1381 = vmatmul.mubr.msk.bf16.vlgmr.msra.gmra.mrb[0].mxu0 %vm243_vm4, %v223_v49  ;;  %1445 = vmatmul.mubr.msk.bf16.vlgmr.msra.gmra.mrb[0].mxu1 %vm243_vm4, %v223_v49  ;;  %v1596_v8 = vpop.permute.xlu0 %1595  ;;  %v684_v19 = vsel %vm247_vm2, %v671_v12, 0 }
  0xa2   : > { %461 = vmatpush1.bf16.msra.mxu0 %v452_v50  ;;  %1449 = vmatpush3.bf16.msra.mxu1 %v458_v51  ;;  %v1598_v9 = vunpack.i.h.bf16 %v1596_v8  ;;  %v1597_v20 = vunpack.i.l.bf16 %v1596_v8 }
  0xa3   : > { %492 = vmatprep.mubr.bf16.mxu0 %v1623_v10  ;;  %1450 = vmatprep.mubr.msk.bf16.mxu1 %vm1624_vm0, %v1622_v5  ;;  %v1601_v25 = vpop.permute.xlu1 %1600 }
  0xa4   : > { %1388 = vmatprep.subr.msk.bf16.mxu0 %vm247_vm2, %v557_v53  ;;  %1454 = vmatprep.subr.bf16.mxu1 %v1622_v5  ;;  %v780_v16 = vsel %vm778_vm7, %v1598_v9, %v775_v11  ;;  %v781_v24 = vsel %vm778_vm7, %v1597_v20, %v1598_v9  ;;  %v1603_v26 = vunpack.i.h.bf16 %v1601_v25  ;;  %v1602_v34 = vunpack.i.l.bf16 %v1601_v25  ;;  %v1407_v9 = vld [vmem:[%s1873_s1 + $0x20] sm:$0xf] }
  0xa5   : > { %v783_v21 = vpack.c.bf16 %v780_v16, %v780_v16  ;;  %v777_v22 = vpop.permute.xlu0 %776  ;;  %v782_v29 = vpack.c.bf16 %v781_v24, %v781_v24 }
  0xa6   : > { %v779_v23 = vsel %vm778_vm7, %v775_v11, %v777_v22  ;;  %v894_v38 = vsel %vm891_vm8, %v1602_v34, %v1603_v26  ;;  %v1240_v11 = vshrl.u32 %v232_v13, 7 }
  0xa7   : > { %v784_v28 = vpack.c.bf16 %v779_v23, %v779_v23  ;;  %v791_v32 = vsel %vm247_vm2, %v782_v29, 0  ;;  %v890_v36 = vpop.permute.xlu1 %889  ;;  %v895_v43 = vpack.c.bf16 %v894_v38, %v894_v38 }
  0xa8   : > { %v1241_v12 = vsub.s32 0, %v1240_v11  ;;  %v1245_v16 = vsub.s32 1, %v1240_v11 }
  0xa9   : > { %v888_v27 = vpop.permute.xlu0 %887  ;;  %v797_v33 = vsel %vm247_vm2, %v784_v28, 0  ;;  %v904_v46 = vsel %vm247_vm2, %v895_v43, 0 }
  0xaa   : > { %v893_v30 = vsel %vm891_vm8, %v1603_v26, %v888_v27  ;;  %v892_v37 = vsel %vm891_vm8, %v888_v27, %v890_v36 }
  0xab   : > { %v896_v35 = vpack.c.bf16 %v893_v30, %v893_v30  ;;  %v1001_v41 = vpop.permute.xlu1 %1000  ;;  %v897_v42 = vpack.c.bf16 %v892_v37, %v892_v37 }
  0xad   : > { %1385 = vmatmul.mubr.msk.bf16.vlgmr.msra.gmra.mrb[0].mxu0 %vm243_vm4, %v1383_v63  ;;  %1451 = vmatmul.mubr.msk.bf16.vlgmr.msra.gmra.mrb[0].mxu1 %vm243_vm4, %v1383_v63  ;;  %v1606_v39 = vpop.permute.xlu0 %1605  ;;  %v910_v47 = vsel %vm247_vm2, %v897_v42, 0 }
  0xae   : > { %574 = vmatpush1.bf16.msra.mxu0 %v565_v0  ;;  %1455 = vmatpush3.bf16.msra.mxu1 %v571_v1  ;;  %v1608_v40 = vunpack.i.h.bf16 %v1606_v39  ;;  %v1607_v48 = vunpack.i.l.bf16 %v1606_v39 }
  0xaf   : > { %605 = vmatprep.mubr.bf16.mxu0 %v1623_v10  ;;  %1456 = vmatprep.mubr.msk.bf16.mxu1 %vm1624_vm0, %v1622_v5  ;;  %v1611_v53 = vpop.permute.xlu1 %1610 }
  0xb0   : > { %1392 = vmatprep.subr.msk.bf16.mxu0 %vm247_vm2, %v670_v3  ;;  %1460 = vmatprep.subr.bf16.mxu1 %v1622_v5  ;;  %v1006_v44 = vsel %vm1004_vm9, %v1608_v40, %v1001_v41  ;;  %v1007_v52 = vsel %vm1004_vm9, %v1607_v48, %v1608_v40  ;;  %v1613_v54 = vunpack.i.h.bf16 %v1611_v53  ;;  %v1612_v62 = vunpack.i.l.bf16 %v1611_v53 }
  0xb1   : > { %v1009_v49 = vpack.c.bf16 %v1006_v44, %v1006_v44  ;;  %v1003_v50 = vpop.permute.xlu0 %1002  ;;  %v1008_v57 = vpack.c.bf16 %v1007_v52, %v1007_v52 }
  0xb2   : > { %v1005_v51 = vsel %vm1004_vm9, %v1001_v41, %v1003_v50  ;;  %v1120_v2 = vsel %vm1117_vm10, %v1612_v62, %v1613_v54 }
  0xb3   : > { %v1010_v56 = vpack.c.bf16 %v1005_v51, %v1005_v51  ;;  %v1017_v60 = vsel %vm247_vm2, %v1008_v57, 0  ;;  %v1116_v0 = vpop.permute.xlu1 %1115  ;;  %v1121_v4 = vpack.c.bf16 %v1120_v2, %v1120_v2 }
  0xb5   : > { %v1114_v55 = vpop.permute.xlu0 %1113  ;;  %v1023_v61 = vsel %vm247_vm2, %v1010_v56, 0  ;;  %v1130_v7 = vsel %vm247_vm2, %v1121_v4, 0 }
  0xb6   : > { %v1119_v58 = vsel %vm1117_vm10, %v1613_v54, %v1114_v55  ;;  %v1118_v1 = vsel %vm1117_vm10, %v1114_v55, %v1116_v0 }
  0xb7   : > { %v1122_v63 = vpack.c.bf16 %v1119_v58, %v1119_v58  ;;  %v1123_v3 = vpack.c.bf16 %v1118_v1, %v1118_v1 }
  0xb9   : > { %1389 = vmatmul.mubr.msk.bf16.vlgmr.msra.gmra.mrb[0].mxu0 %vm243_vm4, %v1387_v17  ;;  %1457 = vmatmul.mubr.msk.bf16.vlgmr.msra.gmra.mrb[0].mxu1 %vm243_vm4, %v1387_v17  ;;  %v1136_v8 = vsel %vm247_vm2, %v1123_v3, 0  ;;  %v1242_v17 = vrot.slane %v1237_v15, %v1241_v12 }
  0xba   : > { %687 = vmatpush1.bf16.msra.mxu0 %v678_v18  ;;  %1461 = vmatpush3.bf16.msra.mxu1 %v684_v19 }
  0xbb   : > { %718 = vmatprep.mubr.bf16.mxu0 %v1623_v10  ;;  %1462 = vmatprep.mubr.msk.bf16.mxu1 %vm1624_vm0, %v1622_v5 }
  0xbc   : > { %1396 = vmatprep.subr.msk.bf16.mxu0 %vm247_vm2, %v783_v21  ;;  %1466 = vmatprep.subr.bf16.mxu1 %v1622_v5 }
  0xc5   : > { %1393 = vmatmul.mubr.msk.bf16.vlgmr.msra.gmra.mrb[0].mxu0 %vm243_vm4, %v1391_v31  ;;  %1463 = vmatmul.mubr.msk.bf16.vlgmr.msra.gmra.mrb[0].mxu1 %vm243_vm4, %v1391_v31 }
  0xc6   : > { %800 = vmatpush1.bf16.msra.mxu0 %v791_v32  ;;  %1467 = vmatpush3.bf16.msra.mxu1 %v797_v33 }
  0xc7   : > { %831 = vmatprep.mubr.bf16.mxu0 %v1623_v10  ;;  %1468 = vmatprep.mubr.msk.bf16.mxu1 %vm1624_vm0, %v1622_v5 }
  0xc8   : > { %1400 = vmatprep.subr.msk.bf16.mxu0 %vm247_vm2, %v896_v35  ;;  %1472 = vmatprep.subr.bf16.mxu1 %v1622_v5 }
  0xd1   : > { %1397 = vmatmul.mubr.msk.bf16.vlgmr.msra.gmra.mrb[0].mxu0 %vm243_vm4, %v1395_v45  ;;  %1469 = vmatmul.mubr.msk.bf16.vlgmr.msra.gmra.mrb[0].mxu1 %vm243_vm4, %v1395_v45 }
  0xd2   : > { %913 = vmatpush1.bf16.msra.mxu0 %v904_v46  ;;  %1473 = vmatpush3.bf16.msra.mxu1 %v910_v47 }
  0xd3   : > { %944 = vmatprep.mubr.bf16.mxu0 %v1623_v10  ;;  %1474 = vmatprep.mubr.msk.bf16.mxu1 %vm1624_vm0, %v1622_v5 }
  0xd4   : > { %1404 = vmatprep.subr.msk.bf16.mxu0 %vm247_vm2, %v1009_v49  ;;  %1478 = vmatprep.subr.bf16.mxu1 %v1622_v5 }
  0xdd   : > { %1401 = vmatmul.mubr.msk.bf16.vlgmr.msra.gmra.mrb[0].mxu0 %vm243_vm4, %v1399_v59  ;;  %1475 = vmatmul.mubr.msk.bf16.vlgmr.msra.gmra.mrb[0].mxu1 %vm243_vm4, %v1399_v59 }
  0xde   : > { %1026 = vmatpush1.bf16.msra.mxu0 %v1017_v60  ;;  %1479 = vmatpush3.bf16.msra.mxu1 %v1023_v61 }
  0xdf   : > { %1057 = vmatprep.mubr.bf16.mxu0 %v1623_v10  ;;  %1480 = vmatprep.mubr.msk.bf16.mxu1 %vm1624_vm0, %v1622_v5 }
  0xe0   : > { %1408 = vmatprep.subr.msk.bf16.mxu0 %vm247_vm2, %v1122_v63  ;;  %1484 = vmatprep.subr.bf16.mxu1 %v1622_v5 }
  0xe9   : > { %1405 = vmatmul.mubr.msk.bf16.vlgmr.msra.gmra.mrb[0].mxu0 %vm243_vm4, %v1403_v6  ;;  %1481 = vmatmul.mubr.msk.bf16.vlgmr.msra.gmra.mrb[0].mxu1 %vm243_vm4, %v1403_v6 }
  0xea   : > { %1139 = vmatpush1.bf16.msra.mxu0 %v1130_v7  ;;  %1485 = vmatpush3.bf16.msra.mxu1 %v1136_v8 }
  0xeb   : > { %1170 = vmatprep.mubr.bf16.mxu0 %v1623_v10  ;;  %1486 = vmatprep.mubr.msk.bf16.mxu1 %vm1624_vm0, %v1622_v5  ;;  %v1249_v10 = vsub.s32 2, %v1240_v11  ;;  %v1246_v5 = vrot.slane %v1237_v15, %v1245_v16 }
  0xed   : > { %v1250_v20 = vrot.slane %v1237_v15, %v1249_v10 }
  0xf5   : > { %1409 = vmatmul.mubr.msk.bf16.vlgmr.msra.gmra.mrb[0].mxu0 %vm243_vm4, %v1407_v9  ;;  %1487 = vmatmul.mubr.msk.bf16.vlgmr.msra.gmra.mrb[0].mxu1 %vm243_vm4, %v1407_v9 }
 0x1c8   : > { %v1172_v18 = vpop.f32.mrb[0].mxu0  ;;  %v1213_v19 = vpop.f32.mrb[0].mxu1 }
 0x1c9   : > { %v1254_v21 = vmul.f32 %v1242_v17, %v1172_v18  ;;  %v1417_v22 = vpack.c.bf16 %v1213_v19, %v1213_v19  ;;  %v1174_v13 = vpop.f32.mrb[1].mxu0  ;;  %v1488_v23 = vpop.f32.mrb[1].mxu1  ;;  %v1256_v30 = vmul.f32 %v1250_v20, %v1213_v19 }
 0x1ca   : > { %v1416_v24 = vpack.c.bf16 %v1174_v13, %v1172_v18  ;;  %v1255_v25 = vmul.f32 %v1246_v5, %v1174_v13  ;;  %v1176_v26 = vpop.f32.mrb[2].mxu0  ;;  %v1216_v27 = vpop.f32.mrb[2].mxu1 }
 0x1cb   : > { %1236 = vst [vmem:[%s204_s28 + $0x8] sm:$0xf] %v1417_v22  ;;  %v1177_v28 = vpop.f32.mrb[3].mxu0  ;;  %v1489_v29 = vpop.f32.mrb[3].mxu1 }
 0x1cc   : > { %1235 = vst [vmem:[%s204_s28] sm:$0xff] %v1416_v24  ;;  %v1257_v31 = vadd.f32 %v1255_v25, %v1254_v21 }
 0x1ce   : > { %v1258_v32 = vadd.f32 %v1257_v31, %v1256_v30 }
 0x1d0   : > { %1259 = vadd.xlane.f32.xlu0 %v1258_v32 }
 0x25d   : > { %v1260_v33 = vpop.xlane.xlu0 %1259 }
 0x25e   : > { %v1261_v34 = vmul.f32 0.00390625, %v1260_v33 }
 0x260   : > { %v1262_v35 = vsub.f32 %v1172_v18, %v1261_v34  ;;  %v1263_v36 = vsub.f32 %v1174_v13, %v1261_v34  ;;  %v1264_v37 = vsub.f32 %v1213_v19, %v1261_v34  ;;  %v1276_v47 = vsel %vm1275_vm11, %v1261_v34, 0.0 }
 0x262   : > { %v1265_v38 = vmul.f32 %v1262_v35, %v1242_v17  ;;  %v1266_v39 = vmul.f32 %v1263_v36, %v1246_v5  ;;  %v1267_v40 = vmul.f32 %v1264_v37, %v1250_v20 }
 0x264   : > { %v1268_v41 = vmul.f32 %v1265_v38, %v1265_v38  ;;  %v1269_v42 = vmul.f32 %v1266_v39, %v1266_v39  ;;  %v1270_v43 = vmul.f32 %v1267_v40, %v1267_v40 }
 0x266   : > { %v1271_v44 = vadd.f32 %v1269_v42, %v1268_v41 }
 0x268   : > { %v1272_v45 = vadd.f32 %v1271_v44, %v1270_v43 }
 0x26a   : > { %1273 = vadd.xlane.f32.xlu1 %v1272_v45 }
 0x2f7   : > { %v1274_v46 = vpop.xlane.xlu1 %1273 }
 0x2f8   : > { %v1278_v48 = vsel %vm1277_vm12, %v1274_v46, 0.0 }
 0x2f9   : > { %v1279_v49 = vadd.f32 %v1278_v48, %v1276_v47 }
 0x2fb   : > { %1280 = vst [vmem:[%s208_s6] sm:$0xff] %v1279_v49 }
 0x2fc PF: > { %s15_s15 = sadd.s32 1, %s1620_s15  }
 0x2fd   : > { %p12_p4 = scmp.ge.s32.totalorder %s15_s15, 4  }
 0x2ff   :  { %14 = sbr.rel (!%p12_p4) target bundleno = 1 (0x1), region = 82 }

</bundles_post_ra>
